<compile_context>
chip_gen: v7x
topology: tpu7x:2x2x1
jax: 0.10.0
libtpu: 0.0.40
codegen_flags: <defaults>
</compile_context>

<pallas_src>
import functools
import math

import jax
import jax.numpy as jnp
from jax.experimental import pallas as pl
from jax.experimental.pallas import tpu as pltpu


_SUBLANES = {1: 32, 2: 16, 4: 8}  # itemsize -> sublane multiple (f64 unsupported)


def _align_up(x, m):
    return ((x + m - 1) // m) * m


def _vmem_budget_bytes():
    """Total VMEM budget for the whole pipeline (all streams, both buffers)."""
    try:
        cap = pltpu.get_tpu_info().vmem_capacity_bytes
    except Exception:
        cap = 64 << 20  # conservative default: v7x physical VMEM per TensorCore
    return int(cap * 6 // 10)  # leave headroom for compiler scratch


def _make_add_kernel(acc_dtype):
    """Kernel: refs = (in_ref_0, ..., in_ref_{k-1}, out_ref)."""

    def kernel(*refs):
        *in_refs, out_ref = refs
        acc = in_refs[0][...].astype(acc_dtype)
        for r in in_refs[1:]:
            acc = acc + r[...].astype(acc_dtype)
        out_ref[...] = acc.astype(out_ref.dtype)

    return kernel


def _choose_layout(total, itemsize, n_inputs):
    """Pick (lanes, block_rows) for a lane-dense (rows, lanes) flat view.

    Returns None when `total` has no 128-multiple lane factorisation.
    """
    sub = _SUBLANES[itemsize]
    budget = _vmem_budget_bytes()
    # (n_inputs + 1) streams x 2 pipeline buffers of one block each.
    block_bytes = budget // (2 * (n_inputs + 1))
    block_bytes = max(min(block_bytes, 8 << 20), 256 << 10)

    for lanes in (1024, 512, 256, 128):
        if total % lanes:
            continue
        rows = total // lanes
        if rows <= sub:
            # Tiny input (only reached under force_pallas): one full-extent block.
            return lanes, rows
        target_rows = max(sub, (block_bytes // (lanes * itemsize)) // sub * sub)
        # Prefer >= 2 grid steps and an even step count so the "parallel" grid
        # axis shards evenly across v7x's two TensorCores (no-op on v5e/v6e).
        steps = max(2, pl.cdiv(rows, target_rows))
        if steps % 2:
            steps += 1
        tr = _align_up(pl.cdiv(rows, steps), sub)
        return lanes, tr
    return None


def add_pallas(xs, *, force_pallas=False):
    """Sum a list/tuple of identically-shaped arrays (kindle Add.forward)."""
    xs = list(xs)
    assert len(xs) >= 1, "Add needs at least one input"
    shape = xs[0].shape
    dtype = xs[0].dtype
    for x in xs:
        assert x.shape == shape and x.dtype == dtype, "all inputs must match"

    if len(xs) == 1:
        return xs[0]

    def xla_add():
        return functools.reduce(jnp.add, xs)

    total = int(math.prod(shape))
    itemsize = jnp.dtype(dtype).itemsize

    # Unsupported element width (e.g. f64): let XLA handle it.
    if itemsize not in _SUBLANES:
        return xla_add()

    # Small-input bypass: pallas_call fixed overhead dwarfs the work below a
    # few MiB of total traffic; XLA's fused add is already at roofline there.
    if not force_pallas and total * itemsize * len(xs) < (4 << 20):
        return xla_add()

    pad = 0
    layout = _choose_layout(total, itemsize, len(xs))
    if layout is None:
        if not force_pallas:
            # No zero-copy lane-dense reshape exists; padding would cost an
            # extra full read+write per tensor, so XLA add (1x traffic) wins.
            return xla_add()
        # Forced kernel path only: minimal pad to a 128-lane multiple.
        pad = _align_up(total, 128) - total
        layout = _choose_layout(total + pad, itemsize, len(xs))
    lanes, tr = layout
    rows = (total + pad) // lanes
    grid = (pl.cdiv(rows, tr),)  # partial tail block is auto-masked by Pallas

    xs_flat = [x.reshape(-1) for x in xs]
    if pad:
        xs_flat = [jnp.pad(xf, (0, pad)) for xf in xs_flat]
    xs2d = [xf.reshape(rows, lanes) for xf in xs_flat]

    # bf16/fp16 accumulate in f32 (VALU slack is free; kernel is HBM-bound).
    if jnp.issubdtype(dtype, jnp.floating) and itemsize < 4:
        acc_dtype = jnp.float32
    else:
        acc_dtype = dtype  # integer sums keep wrapping semantics (matches torch)

    spec = pl.BlockSpec((tr, lanes), lambda i: (i, 0))
    block_bytes = tr * lanes * itemsize
    vmem_limit = int(max((len(xs) + 1) * 2 * block_bytes + (4 << 20), 16 << 20))

    out2d = pl.pallas_call(
        _make_add_kernel(acc_dtype),
        out_shape=jax.ShapeDtypeStruct((rows, lanes), dtype),
        grid_spec=pltpu.PrefetchScalarGridSpec(
            num_scalar_prefetch=0,
            grid=grid,
            in_specs=[spec] * len(xs2d),
            out_specs=spec,
        ),
        compiler_params=pltpu.CompilerParams(
            dimension_semantics=("parallel",),
            vmem_limit_bytes=vmem_limit,
        ),
    )(*xs2d)

    out_flat = out2d.reshape(-1)
    if pad:
        out_flat = out_flat[:total]
    return out_flat.reshape(shape)


if __name__ == "__main__":
    key = jax.random.PRNGKey(0)
    k1, k2, k3 = jax.random.split(key, 3)

    # NCHW inputs, as the PyTorch Add module would receive from a conv stack.
    shape = (2, 4, 16, 16)
    x0 = jax.random.normal(k1, shape, dtype=jnp.float32)
    x1 = jax.random.normal(k2, shape, dtype=jnp.float32)
    x2 = jax.random.normal(k3, shape, dtype=jnp.float32)
    ref = x0 + x1 + x2

    # Default path (small-input bypass -> plain fused XLA add).
    out = jax.block_until_ready(add_pallas([x0, x1, x2]))
    assert out.shape == ref.shape and out.dtype == ref.dtype
    assert jnp.allclose(out, ref, atol=1e-6, rtol=1e-6)

    # Force the Pallas kernel: exact lane-dense factorisation, full-extent block.
    out_k = jax.block_until_ready(add_pallas([x0, x1, x2], force_pallas=True))
    assert out_k.shape == ref.shape and out_k.dtype == ref.dtype
    assert jnp.allclose(out_k, ref, atol=1e-6, rtol=1e-6)

    # Multi-step grid with a masked partial tail block (rows % tr != 0).
    shape2 = (2, 3, 40, 128)  # 30720 elems -> rows=30, block rows=16, grid=2
    y0 = jax.random.normal(k1, shape2, dtype=jnp.float32)
    y1 = jax.random.normal(k2, shape2, dtype=jnp.float32)
    y2 = jax.random.normal(k3, shape2, dtype=jnp.float32)
    ref2 = y0 + y1 + y2
    out2 = jax.block_until_ready(add_pallas([y0, y1, y2], force_pallas=True))
    assert out2.shape == ref2.shape
    assert jnp.allclose(out2, ref2, atol=1e-6, rtol=1e-6)

    # Awkward shape: no 128-lane factorisation.
    shape3 = (3, 5, 7, 11)
    z0 = jax.random.normal(k1, shape3, dtype=jnp.float32)
    z1 = jax.random.normal(k2, shape3, dtype=jnp.float32)
    ref3 = z0 + z1
    # Forced kernel: minimal 128-lane pad.
    out3 = jax.block_until_ready(add_pallas([z0, z1], force_pallas=True))
    assert out3.shape == ref3.shape
    assert jnp.allclose(out3, ref3, atol=1e-6, rtol=1e-6)
    # Default: falls back to XLA's fused add (1x HBM traffic).
    out3b = jax.block_until_ready(add_pallas([z0, z1]))
    assert jnp.allclose(out3b, ref3, atol=1e-6, rtol=1e-6)

    # bf16 inputs accumulate in f32 inside the kernel, cast on store.
    shape4 = (4, 8, 32)
    w0 = jax.random.normal(k1, shape4, dtype=jnp.bfloat16)
    w1 = jax.random.normal(k2, shape4, dtype=jnp.bfloat16)
    w2 = jax.random.normal(k3, shape4, dtype=jnp.bfloat16)
    ref4 = (w0.astype(jnp.float32) + w1.astype(jnp.float32)
            + w2.astype(jnp.float32)).astype(jnp.bfloat16)
    out4 = jax.block_until_ready(add_pallas([w0, w1, w2], force_pallas=True))
    assert out4.dtype == jnp.bfloat16 and out4.shape == ref4.shape
    assert jnp.allclose(out4.astype(jnp.float32), ref4.astype(jnp.float32),
                        atol=3e-2, rtol=3e-2)

    print("KERNEL_OK")
</pallas_src>

<mosaic_0001>
module attributes {stable_mosaic.version = 11 : i64} {
  func.func @kernel(%arg0: i32, %arg1: memref<2x1024xf32, #tpu.memory_space<vmem>>, %arg2: memref<2x1024xf32, #tpu.memory_space<vmem>>, %arg3: memref<2x1024xf32, #tpu.memory_space<vmem>>, %arg4: memref<2x1024xf32, #tpu.memory_space<vmem>>) attributes {dimension_semantics = [#tpu.dimension_semantics<parallel>], iteration_bounds = array<i64: 1>, scalar_prefetch = 0 : i64, scratch_operands = 0 : i64, tpu.core_type = #tpu.core_type<tc>, window_params = [{transform_indices = @transform_0, window_bounds = array<i64: 2, 1024>}, {transform_indices = @transform_1, window_bounds = array<i64: 2, 1024>}, {transform_indices = @transform_2, window_bounds = array<i64: 2, 1024>}, {transform_indices = @transform_3, window_bounds = array<i64: 2, 1024>}]} {
    %c0 = arith.constant 0 : index
    %c0_0 = arith.constant 0 : index
    %0 = vector.load %arg1[%c0, %c0_0] : memref<2x1024xf32, #tpu.memory_space<vmem>>, vector<2x1024xf32>
    %c0_1 = arith.constant 0 : index
    %c0_2 = arith.constant 0 : index
    %1 = vector.load %arg2[%c0_1, %c0_2] : memref<2x1024xf32, #tpu.memory_space<vmem>>, vector<2x1024xf32>
    %2 = arith.addf %0, %1 : vector<2x1024xf32>
    %c0_3 = arith.constant 0 : index
    %c0_4 = arith.constant 0 : index
    %3 = vector.load %arg3[%c0_3, %c0_4] : memref<2x1024xf32, #tpu.memory_space<vmem>>, vector<2x1024xf32>
    %4 = arith.addf %2, %3 : vector<2x1024xf32>
    %c0_5 = arith.constant 0 : index
    %c0_6 = arith.constant 0 : index
    %5 = vector.load %arg4[%c0_5, %c0_6] : memref<2x1024xf32, #tpu.memory_space<vmem>>, vector<2x1024xf32>
    tpu.vector_store %arg4[%c0_5, %c0_6], %4 {strides = array<i32>} : memref<2x1024xf32, #tpu.memory_space<vmem>>, vector<2x1024xf32>,
    return
  }
  func.func @transform_0(%arg0: i32) -> (i32, i32) {
    %c0_i32 = arith.constant 0 : i32
    %c0_i32_0 = arith.constant 0 : i32
    return %arg0, %c0_i32 : i32, i32
  }
  func.func @transform_1(%arg0: i32) -> (i32, i32) {
    %c0_i32 = arith.constant 0 : i32
    %c0_i32_0 = arith.constant 0 : i32
    return %arg0, %c0_i32 : i32, i32
  }
  func.func @transform_2(%arg0: i32) -> (i32, i32) {
    %c0_i32 = arith.constant 0 : i32
    %c0_i32_0 = arith.constant 0 : i32
    return %arg0, %c0_i32 : i32, i32
  }
  func.func @transform_3(%arg0: i32) -> (i32, i32) {
    %c0_i32 = arith.constant 0 : i32
    %c0_i32_0 = arith.constant 0 : i32
    return %arg0, %c0_i32 : i32, i32
  }
}

</mosaic_0001>

<bundles_post_ra>
// kernel: tpu_custom_call.1
= control target key start
LH: loop header
LB: loop body
LE: loop exit
PB: predicated region body
PF: predicated region fallthrough
CT: control target
= control target key end

     0   :  { %8 = vsyncpa [#allocation3], 0  ;;  %s248_s0 = inlined_call_operand.hbm [shape: f32[2,1024], index: 0, kind: input, shape index: {}]   ;;  %s249_s1 = inlined_call_operand.hbm [shape: f32[2,1024], index: 1, kind: input, shape index: {}]   ;;  %s250_s2 = inlined_call_operand.hbm [shape: f32[2,1024], index: 2, kind: input, shape index: {}]   ;;  %s251_s3 = inlined_call_operand.hbm [shape: f32[2,1024], index: 3, kind: output, shape index: {}]  }
   0x1   :  { %9 = vsyncpa [#allocation6], 0 }
   0x2   :  { %10 = vsyncpa [#allocation4], 0  ;;  %s176_s12 = smov [#allocation5]   ;;  %s177_s14 = smov [#allocation2]  }
   0x3   :  { %s27_s13 = sshll.u32 %s176_s12, 4  ;;  %s17_s15 = sshll.u32 %s177_s14, 4  ;;  %s28_s13 = int_to_ptr.vmem [resolvable:$true] %s27_s13  ;;  %s18_s15 = int_to_ptr.vmem [resolvable:$true] %s17_s15 }
   0x4   :  { %s82_s18 = scalar_lea.hbm %s249_s1, 256 }
   0x5   :  { %p83_p0 = scmp.ne.s32.totalorder %s249_s1, %s82_s18  ;;  %p86_p1 = scmp.lt.u32.totalorder %s82_s18, %s249_s1 }
   0x7   :  { %p88_p2 = pnand %p86_p1, %p83_p0 }
   0x9   :  { %91 = shalt.err (!%p88_p2)
}
   0xa   :  { %s92_s23 = scalar_lea.vmem %s28_s13, 256  ;;  %p97_p4 = scmp.lt.s32.totalorder %s28_s13, %s28_s13 }
   0xb   :  { %p93_p3 = scmp.ne.s32.totalorder %s28_s13, %s92_s23  ;;  %p98_p5 = scmp.lt.s32.totalorder %s92_s23, %s92_s23 }
   0xd   :  { %p99_p6 = por %p98_p5, %p97_p4 }
   0xf   :  { %p100_p7 = pnand %p99_p6, %p93_p3 }
  0x11   :  { %103 = shalt.err (!%p100_p7)
}
  0x12   :  { %30 = dma.hbm_to_vmem [thread:$0]  %s249_s1, 256, %s28_s13, [#allocation6]  }
  0x13   :  { %s104_s28 = scalar_lea.hbm %s248_s0, 256 }
  0x14   :  { %p105_p8 = scmp.ne.s32.totalorder %s248_s0, %s104_s28  ;;  %p108_p9 = scmp.lt.u32.totalorder %s104_s28, %s248_s0 }
  0x16   :  { %p110_p10 = pnand %p108_p9, %p105_p8 }
  0x18   :  { %113 = shalt.err (!%p110_p10)
}
  0x19   :  { %s114_s6 = scalar_lea.vmem %s18_s15, 256  ;;  %p119_p12 = scmp.lt.s32.totalorder %s18_s15, %s18_s15 }
  0x1a   :  { %p115_p11 = scmp.ne.s32.totalorder %s18_s15, %s114_s6  ;;  %p120_p13 = scmp.lt.s32.totalorder %s114_s6, %s114_s6 }
  0x1c   :  { %p121_p0 = por %p120_p13, %p119_p12 }
  0x1e   :  { %p122_p1 = pnand %p121_p0, %p115_p11 }
  0x20   :  { %125 = shalt.err (!%p122_p1)
}
  0x21   :  { %20 = dma.hbm_to_vmem [thread:$0]  %s248_s0, 256, %s18_s15, [#allocation3]  }
  0x22   :  { %s178_s8 = smov [#allocation7]   ;;  %s126_s12 = scalar_lea.hbm %s250_s2, 256 }
  0x23   :  { %s37_s9 = sshll.u32 %s178_s8, 4  ;;  %p127_p2 = scmp.ne.s32.totalorder %s250_s2, %s126_s12  ;;  %s38_s9 = int_to_ptr.vmem [resolvable:$true] %s37_s9 }
  0x24   :  { %p130_p3 = scmp.lt.u32.totalorder %s126_s12, %s250_s2 }
  0x26   :  { %p132_p4 = pnand %p130_p3, %p127_p2 }
  0x28   :  { %135 = shalt.err (!%p132_p4)
}
  0x29   :  { %s136_s18 = scalar_lea.vmem %s38_s9, 256  ;;  %p141_p6 = scmp.lt.s32.totalorder %s38_s9, %s38_s9 }
  0x2a   :  { %p137_p5 = scmp.ne.s32.totalorder %s38_s9, %s136_s18  ;;  %p142_p7 = scmp.lt.s32.totalorder %s136_s18, %s136_s18 }
  0x2c   :  { %p143_p8 = por %p142_p7, %p141_p6 }
  0x2e   :  { %p144_p9 = pnand %p143_p8, %p137_p5 }
  0x30   :  { %147 = shalt.err (!%p144_p9)
}
  0x31   :  { %40 = dma.hbm_to_vmem [thread:$0]  %s250_s2, 256, %s38_s9, [#allocation6]  }
  0x32   :  { %170 = dma.done.wait [#allocation3], 256  }
  0x33   :  { %171 = vsyncadd [#allocation3], 4294967040 }
  0x34   :  { %172 = dma.done.wait [#allocation6], 512  }
  0x35   :  { %173 = vsyncadd [#allocation6], 4294966784  ;;  %v50_v0 = vld [vmem:[#allocation2] sm:$0xff]  ;;  %v52_v1 = vld [vmem:[#allocation5] sm:$0xff]  ;;  %s179_s19 = smov [#allocation8]  }
  0x36   :  { %v56_v2 = vld [vmem:[#allocation7] sm:$0xff]  ;;  %v54_v3 = vadd.f32 %v52_v1, %v50_v0  ;;  %v51_v4 = vld [vmem:[#allocation2 + $0x8] sm:$0xff]  ;;  %v53_v5 = vld [vmem:[#allocation5 + $0x8] sm:$0xff]  ;;  %s68_s20 = sshll.u32 %s179_s19, 4  ;;  %s69_s20 = int_to_ptr.vmem [resolvable:$true] %s68_s20 }
  0x37   :  { %v57_v6 = vld [vmem:[#allocation7 + $0x8] sm:$0xff]  ;;  %v55_v7 = vadd.f32 %v53_v5, %v51_v4  ;;  %s148_s2 = scalar_lea.vmem %s69_s20, 256  ;;  %p153_p11 = scmp.lt.s32.totalorder %s69_s20, %s69_s20 }
  0x38   :  { %v58_v8 = vadd.f32 %v56_v2, %v54_v3  ;;  %p149_p10 = scmp.ne.s32.totalorder %s69_s20, %s148_s2  ;;  %p154_p12 = scmp.lt.s32.totalorder %s148_s2, %s148_s2 }
  0x39   :  { %v59_v9 = vadd.f32 %v57_v6, %v55_v7 }
  0x3a   :  { %60 = vst [vmem:[#allocation8] sm:$0xff] %v58_v8  ;;  %p155_p13 = por %p154_p12, %p153_p11 }
  0x3b   :  { %61 = vst [vmem:[#allocation8 + $0x8] sm:$0xff] %v59_v9 }
  0x3c   :  { %p156_p0 = pnand %p155_p13, %p149_p10 }
  0x3e   :  { %159 = shalt.err (!%p156_p0)
}
  0x3f   :  { %s160_s23 = scalar_lea.hbm %s251_s3, 256 }
  0x40   :  { %p161_p1 = scmp.ne.s32.totalorder %s251_s3, %s160_s23  ;;  %p164_p2 = scmp.lt.u32.totalorder %s160_s23, %s251_s3 }
  0x42   :  { %p166_p3 = pnand %p164_p2, %p161_p1 }
  0x44   :  { %169 = shalt.err (!%p166_p3)
}
  0x45   :  { %71 = dma.vmem_to_hbm [thread:$0]  %s69_s20, 256, %s251_s3, [#allocation4]  }
  0x46   :  { %174 = dma.done.wait [#allocation4], 256  }
  0x47   :  { %175 = vsyncadd [#allocation4], 4294967040 }
  0x48   :  { %75 = vsyncpa [#allocation3], 1 }
  0x49   :  { %76 = vsyncpa [#allocation6], 1 }
  0x4a   :  { %77 = vsyncpa [#allocation4], 1 }

</bundles_post_ra>
